<compile_context>
chip_gen: v7x
topology: tpu7x:2x2x1
jax: 0.10.0
libtpu: 0.0.40
codegen_flags: <defaults>
</compile_context>

<pallas_src>
import functools

import jax
import jax.numpy as jnp
from jax.experimental import pallas as pl
from jax.experimental.pallas import tpu as pltpu


def net_kernel(w_ref, b_ref, x_ref, o_ref):
    # w_ref: (out_f*in_f,) f32 in SMEM, PyTorch row-major (out, in) flattened
    # b_ref: (out_f,)      f32 in SMEM
    # x_ref: (in_f,  M_TILE, 128) f32 in VMEM   (batch on sublane+lane axes)
    # o_ref: (out_f, M_TILE, 128) f32 in VMEM
    in_f = x_ref.shape[0]
    out_f = o_ref.shape[0]

    # Dense (M_TILE, 128) slabs, one per input feature.
    xs = [x_ref[i] for i in range(in_f)]

    # Linear + ReLU, fully unrolled VPU broadcast mul/adds.
    acts = []
    for j in range(out_f):
        l = xs[0] * w_ref[j * in_f + 0]
        for i in range(1, in_f):
            l = l + xs[i] * w_ref[j * in_f + i]
        l = l + b_ref[j]
        acts.append(jnp.maximum(l, 0.0))

    # Softmax over the out_f feature slabs (elementwise across slabs).
    m = acts[0]
    for a in acts[1:]:
        m = jnp.maximum(m, a)
    es = [jnp.exp(a - m) for a in acts]
    denom = es[0]
    for e in es[1:]:
        denom = denom + e
    inv = pl.reciprocal(denom)  # exact: EUP/VALU have slack vs. DMA

    for j in range(out_f):
        o_ref[j] = (es[j] * inv).astype(o_ref.dtype)


def _choose_m_tile(rows, m_tile_max):
    """Pick a sublane-aligned row-tile; aim for >=2 grid steps (v7x dual-TC)."""
    if rows <= 8:
        return rows  # block == full array dim, allowed by the (8,128) rule
    target = min(m_tile_max, pl.cdiv(rows, 2))
    return max(8, (target // 8) * 8)


@functools.partial(jax.jit, static_argnames=("m_tile_max",))
def net_forward(x, weight, bias, *, m_tile_max=2048):
    """x: (N, 2) f32; weight: (3, 2) f32 (PyTorch layout); bias: (3,) f32."""
    n, in_f = x.shape
    out_f = weight.shape[0]
    lane = 128

    rows = pl.cdiv(n, lane)
    m_tile = _choose_m_tile(rows, m_tile_max)
    rows_pad = pl.cdiv(rows, m_tile) * m_tile
    n_pad = rows_pad * lane

    # Feature-major padded layout: (in_f, rows_pad, 128).  Padded columns
    # just compute softmax(relu(bias)) and are discarded below.
    xt = jnp.zeros((in_f, n_pad), dtype=jnp.float32).at[:, :n].set(x.T)
    xt = xt.reshape(in_f, rows_pad, lane)

    w_flat = weight.reshape(-1).astype(jnp.float32)   # (out_f*in_f,)
    b_flat = bias.reshape(-1).astype(jnp.float32)     # (out_f,)

    out = pl.pallas_call(
        net_kernel,
        out_shape=jax.ShapeDtypeStruct((out_f, rows_pad, lane), jnp.float32),
        grid_spec=pltpu.PrefetchScalarGridSpec(
            num_scalar_prefetch=0,
            grid=(rows_pad // m_tile,),
            in_specs=[
                pl.BlockSpec(memory_space=pltpu.MemorySpace.SMEM),   # weight
                pl.BlockSpec(memory_space=pltpu.MemorySpace.SMEM),   # bias
                pl.BlockSpec((in_f, m_tile, lane), lambda i: (0, i, 0)),
            ],
            out_specs=pl.BlockSpec((out_f, m_tile, lane), lambda i: (0, i, 0)),
        ),
        compiler_params=pltpu.CompilerParams(
            dimension_semantics=("parallel",),   # shards steps across v7x TCs
            vmem_limit_bytes=32 << 20,           # headroom on v5e/v6e/v7x
        ),
    )(w_flat, b_flat, xt)

    # Restore the PyTorch-facing (N, out_features) contract.
    return out.reshape(out_f, n_pad)[:, :n].T


if __name__ == "__main__":
    key = jax.random.PRNGKey(0)
    kx, kw = jax.random.split(key)

    # Parameter init matching the module: weight ~ U(-1,1) (3,2); bias zeros(3)
    weight = jax.random.uniform(kw, (3, 2), dtype=jnp.float32,
                                minval=-1.0, maxval=1.0)
    bias = jnp.zeros((3,), dtype=jnp.float32)

    # Small input consistent with Linear(2, 3): batch=8, features=2
    x = jax.random.normal(kx, (8, 2), dtype=jnp.float32)

    y = net_forward(x, weight, bias)
    y = jax.block_until_ready(y)

    # Reference check (exact reciprocal -> tight tolerance)
    ref = jax.nn.softmax(jnp.maximum(x @ weight.T + bias, 0.0), axis=-1)
    assert y.shape == (8, 3)
    assert jnp.allclose(y, ref, atol=1e-5, rtol=1e-5)
    row_sums = jnp.sum(y, axis=-1)
    assert jnp.allclose(row_sums, jnp.ones_like(row_sums), atol=1e-5)

    print("KERNEL_OK")
</pallas_src>

<mosaic_0001>
module attributes {stable_mosaic.version = 11 : i64} {
  func.func @net_kernel(%arg0: i32, %arg1: memref<6xf32, #tpu.memory_space<smem>>, %arg2: memref<3xf32, #tpu.memory_space<smem>>, %arg3: memref<2x1x128xf32, #tpu.memory_space<vmem>>, %arg4: memref<3x1x128xf32, #tpu.memory_space<vmem>>) attributes {dimension_semantics = [#tpu.dimension_semantics<parallel>], iteration_bounds = array<i64: 1>, scalar_prefetch = 0 : i64, scratch_operands = 0 : i64, tpu.core_type = #tpu.core_type<tc>, window_params = [{transform_indices = @transform_0, window_bounds = array<i64: 6>}, {transform_indices = @transform_1, window_bounds = array<i64: 3>}, {transform_indices = @transform_2, window_bounds = array<i64: 2, 1, 128>}, {transform_indices = @transform_3, window_bounds = array<i64: 3, 1, 128>}]} {
    %c0 = arith.constant 0 : index
    %c0_0 = arith.constant 0 : index
    %c0_1 = arith.constant 0 : index
    %0 = vector.load %arg3[%c0, %c0_0, %c0_1] : memref<2x1x128xf32, #tpu.memory_space<vmem>>, vector<1x1x128xf32>
    %1 = vector.shape_cast %0 : vector<1x1x128xf32> to vector<1x128xf32>
    %c1 = arith.constant 1 : index
    %c0_2 = arith.constant 0 : index
    %c0_3 = arith.constant 0 : index
    %2 = vector.load %arg3[%c1, %c0_2, %c0_3] : memref<2x1x128xf32, #tpu.memory_space<vmem>>, vector<1x1x128xf32>
    %3 = vector.shape_cast %2 : vector<1x1x128xf32> to vector<1x128xf32>
    %c0_4 = arith.constant 0 : index
    %4 = memref.load %arg1[%c0_4] : memref<6xf32, #tpu.memory_space<smem>>
    %5 = vector.broadcast %4 : f32 to vector<1x128xf32>
    %6 = arith.mulf %1, %5 : vector<1x128xf32>
    %c1_5 = arith.constant 1 : index
    %7 = memref.load %arg1[%c1_5] : memref<6xf32, #tpu.memory_space<smem>>
    %8 = vector.broadcast %7 : f32 to vector<1x128xf32>
    %9 = arith.mulf %3, %8 : vector<1x128xf32>
    %10 = arith.addf %6, %9 : vector<1x128xf32>
    %c0_6 = arith.constant 0 : index
    %11 = memref.load %arg2[%c0_6] : memref<3xf32, #tpu.memory_space<smem>>
    %12 = vector.broadcast %11 : f32 to vector<1x128xf32>
    %13 = arith.addf %10, %12 : vector<1x128xf32>
    %cst = arith.constant 0.000000e+00 : f32
    %14 = vector.broadcast %cst : f32 to vector<1x128xf32>
    %15 = arith.maximumf %13, %14 : vector<1x128xf32>
    %c2 = arith.constant 2 : index
    %16 = memref.load %arg1[%c2] : memref<6xf32, #tpu.memory_space<smem>>
    %17 = vector.broadcast %16 : f32 to vector<1x128xf32>
    %18 = arith.mulf %1, %17 : vector<1x128xf32>
    %c3 = arith.constant 3 : index
    %19 = memref.load %arg1[%c3] : memref<6xf32, #tpu.memory_space<smem>>
    %20 = vector.broadcast %19 : f32 to vector<1x128xf32>
    %21 = arith.mulf %3, %20 : vector<1x128xf32>
    %22 = arith.addf %18, %21 : vector<1x128xf32>
    %c1_7 = arith.constant 1 : index
    %23 = memref.load %arg2[%c1_7] : memref<3xf32, #tpu.memory_space<smem>>
    %24 = vector.broadcast %23 : f32 to vector<1x128xf32>
    %25 = arith.addf %22, %24 : vector<1x128xf32>
    %cst_8 = arith.constant 0.000000e+00 : f32
    %26 = vector.broadcast %cst_8 : f32 to vector<1x128xf32>
    %27 = arith.maximumf %25, %26 : vector<1x128xf32>
    %c4 = arith.constant 4 : index
    %28 = memref.load %arg1[%c4] : memref<6xf32, #tpu.memory_space<smem>>
    %29 = vector.broadcast %28 : f32 to vector<1x128xf32>
    %30 = arith.mulf %1, %29 : vector<1x128xf32>
    %c5 = arith.constant 5 : index
    %31 = memref.load %arg1[%c5] : memref<6xf32, #tpu.memory_space<smem>>
    %32 = vector.broadcast %31 : f32 to vector<1x128xf32>
    %33 = arith.mulf %3, %32 : vector<1x128xf32>
    %34 = arith.addf %30, %33 : vector<1x128xf32>
    %c2_9 = arith.constant 2 : index
    %35 = memref.load %arg2[%c2_9] : memref<3xf32, #tpu.memory_space<smem>>
    %36 = vector.broadcast %35 : f32 to vector<1x128xf32>
    %37 = arith.addf %34, %36 : vector<1x128xf32>
    %cst_10 = arith.constant 0.000000e+00 : f32
    %38 = vector.broadcast %cst_10 : f32 to vector<1x128xf32>
    %39 = arith.maximumf %37, %38 : vector<1x128xf32>
    %40 = arith.maximumf %15, %27 : vector<1x128xf32>
    %41 = arith.maximumf %40, %39 : vector<1x128xf32>
    %42 = arith.subf %15, %41 : vector<1x128xf32>
    %43 = math.exp %42 : vector<1x128xf32>
    %44 = arith.subf %27, %41 : vector<1x128xf32>
    %45 = math.exp %44 : vector<1x128xf32>
    %46 = arith.subf %39, %41 : vector<1x128xf32>
    %47 = math.exp %46 : vector<1x128xf32>
    %48 = arith.addf %43, %45 : vector<1x128xf32>
    %49 = arith.addf %48, %47 : vector<1x128xf32>
    %50 = tpu.reciprocal %49 : vector<1x128xf32> -> vector<1x128xf32>
    %51 = arith.mulf %43, %50 : vector<1x128xf32>
    %c0_11 = arith.constant 0 : index
    %c0_12 = arith.constant 0 : index
    %c0_13 = arith.constant 0 : index
    %52 = vector.load %arg4[%c0_11, %c0_12, %c0_13] : memref<3x1x128xf32, #tpu.memory_space<vmem>>, vector<1x1x128xf32>
    %53 = vector.shape_cast %52 : vector<1x1x128xf32> to vector<1x128xf32>
    %54 = vector.shape_cast %51 : vector<1x128xf32> to vector<1x1x128xf32>
    tpu.vector_store %arg4[%c0_11, %c0_12, %c0_13], %54 {strides = array<i32>} : memref<3x1x128xf32, #tpu.memory_space<vmem>>, vector<1x1x128xf32>,
    %55 = arith.mulf %45, %50 : vector<1x128xf32>
    %c1_14 = arith.constant 1 : index
    %c0_15 = arith.constant 0 : index
    %c0_16 = arith.constant 0 : index
    %56 = vector.load %arg4[%c1_14, %c0_15, %c0_16] : memref<3x1x128xf32, #tpu.memory_space<vmem>>, vector<1x1x128xf32>
    %57 = vector.shape_cast %56 : vector<1x1x128xf32> to vector<1x128xf32>
    %58 = vector.shape_cast %55 : vector<1x128xf32> to vector<1x1x128xf32>
    tpu.vector_store %arg4[%c1_14, %c0_15, %c0_16], %58 {strides = array<i32>} : memref<3x1x128xf32, #tpu.memory_space<vmem>>, vector<1x1x128xf32>,
    %59 = arith.mulf %47, %50 : vector<1x128xf32>
    %c2_17 = arith.constant 2 : index
    %c0_18 = arith.constant 0 : index
    %c0_19 = arith.constant 0 : index
    %60 = vector.load %arg4[%c2_17, %c0_18, %c0_19] : memref<3x1x128xf32, #tpu.memory_space<vmem>>, vector<1x1x128xf32>
    %61 = vector.shape_cast %60 : vector<1x1x128xf32> to vector<1x128xf32>
    %62 = vector.shape_cast %59 : vector<1x128xf32> to vector<1x1x128xf32>
    tpu.vector_store %arg4[%c2_17, %c0_18, %c0_19], %62 {strides = array<i32>} : memref<3x1x128xf32, #tpu.memory_space<vmem>>, vector<1x1x128xf32>,
    return
  }
  func.func @transform_0(%arg0: i32) -> i32 {
    %c0_i32 = arith.constant 0 : i32
    %c0_i32_0 = arith.constant 0 : i32
    return %c0_i32 : i32
  }
  func.func @transform_1(%arg0: i32) -> i32 {
    %c0_i32 = arith.constant 0 : i32
    %c0_i32_0 = arith.constant 0 : i32
    return %c0_i32 : i32
  }
  func.func @transform_2(%arg0: i32) -> (i32, i32, i32) {
    %c0_i32 = arith.constant 0 : i32
    %c0_i32_0 = arith.constant 0 : i32
    %c0_i32_1 = arith.constant 0 : i32
    return %c0_i32, %arg0, %c0_i32_0 : i32, i32, i32
  }
  func.func @transform_3(%arg0: i32) -> (i32, i32, i32) {
    %c0_i32 = arith.constant 0 : i32
    %c0_i32_0 = arith.constant 0 : i32
    %c0_i32_1 = arith.constant 0 : i32
    return %c0_i32, %arg0, %c0_i32_0 : i32, i32, i32
  }
}

</mosaic_0001>

<bundles_post_ra>
// kernel: net_forward.1
= control target key start
LH: loop header
LB: loop body
LE: loop exit
PB: predicated region body
PF: predicated region fallthrough
CT: control target
= control target key end

     0   :  { %8 = vsyncpa [#allocation3], 0  ;;  %s194_s0 = inlined_call_operand.vmem [shape: f32[6], index: 0, kind: input, shape index: {}]   ;;  %s195_s1 = inlined_call_operand.vmem [shape: f32[3], index: 1, kind: input, shape index: {}]   ;;  %s196_s2 = inlined_call_operand.vmem [shape: f32[2,1,128], index: 2, kind: input, shape index: {}]   ;;  %s197_s3 = inlined_call_operand.vmem [shape: f32[3,1,128], index: 3, kind: output, shape index: {}]  }
   0x1   :  { %s16_s14 = sshll.u32 %s194_s0, 4  ;;  %s17_s14 = int_to_ptr.vmem [resolvable:$true] %s16_s14 }
   0x2   :  { %9 = vsyncpa [#allocation5], 0  ;;  %s26_s17 = sshll.u32 %s195_s1, 4  ;;  %s123_s18 = scalar_lea.vmem %s17_s14, 16  ;;  %s27_s17 = int_to_ptr.vmem [resolvable:$true] %s26_s17 }
   0x3   :  { %p124_p0 = scmp.ne.s32.totalorder %s17_s14, %s123_s18  ;;  %p128_p1 = scmp.lt.s32.totalorder %s17_s14, %s17_s14 }
   0x4   :  { %p129_p2 = scmp.lt.s32.totalorder %s123_s18, %s123_s18 }
   0x6   :  { %p130_p3 = por %p129_p2, %p128_p1 }
   0x8   :  { %p131_p4 = pnand %p130_p3, %p124_p0 }
   0xa   :  { %134 = shalt.err (!%p131_p4)
}
   0xb   :  { %s151_s19 = smov [#allocation2]   ;;  %s135_s20 = scalar_lea.vmem %s27_s17, 16 }
   0xc   :  { %19 = dma.vmem_to_smem %s17_s14, 16, %s151_s19, [#allocation3]  }
   0xd   :  { %p136_p5 = scmp.ne.s32.totalorder %s27_s17, %s135_s20  ;;  %p140_p6 = scmp.lt.s32.totalorder %s27_s17, %s27_s17 }
   0xe   :  { %p141_p7 = scmp.lt.s32.totalorder %s135_s20, %s135_s20 }
  0x10   :  { %p142_p8 = por %p141_p7, %p140_p6 }
  0x12   :  { %p143_p9 = pnand %p142_p8, %p136_p5 }
  0x14   :  { %146 = shalt.err (!%p143_p9)
}
  0x15   :  { %s152_s0 = smov [#allocation4]  }
  0x16   :  { %29 = dma.vmem_to_smem %s27_s17, 16, %s152_s0, [#allocation5]  }
  0x17   :  { %147 = dma.done.wait [#allocation3], 16  }
  0x18   :  { %148 = vsyncadd [#allocation3], 4294967280 }
  0x19   :  { %149 = dma.done.wait [#allocation5], 16  }
  0x1a   :  { %150 = vsyncadd [#allocation5], 4294967280 }
  0x1b   :  { %38 = sfence }
  0x1c   :  { %s42_s1 = sld [smem:[#allocation2]]  ;;  %s104_s21 = sld [smem:[#allocation2 + $0x1]]  ;;  %v39_v0 = vld [vmem:[%s196_s2] sm:$0x1]  ;;  %v103_v1 = vld [vmem:[%s196_s2 + $0x1] sm:$0x1] }
  0x1d   :  { %s49_s22 = sld [smem:[#allocation4]]  ;;  %s105_s23 = sld [smem:[#allocation2 + $0x2]] }
  0x1e   :  { %s106_s24 = sld [smem:[#allocation2 + $0x3]]  ;;  %s107_s25 = sld [smem:[#allocation4 + $0x1]] }
  0x1f   :  { %s108_s26 = sld [smem:[#allocation2 + $0x4]]  ;;  %s109_s29 = sld [smem:[#allocation2 + $0x5]] }
  0x20   :  { %s110_s30 = sld [smem:[#allocation4 + $0x2]] }
  0x22   :  { %v43_v2 = vstv %s42_s1  ;;  %v46_v4 = vstv %s104_s21 }
  0x23   :  { %v44_v3 = vmul.f32 %v43_v2, %v39_v0  ;;  %v47_v5 = vmul.f32 %v103_v1, %v46_v4  ;;  %v54_v6 = vstv %s105_s23  ;;  %v50_v8 = vstv %s49_s22 }
  0x24   :  { %v57_v7 = vstv %s106_s24  ;;  %v55_v9 = vmul.f32 %v54_v6, %v39_v0  ;;  %v61_v13 = vstv %s107_s25 }
  0x25   :  { %v58_v10 = vmul.f32 %v103_v1, %v57_v7  ;;  %v65_v11 = vstv %s108_s26  ;;  %v48_v12 = vadd.f32 %v47_v5, %v44_v3  ;;  %v68_v15 = vstv %s109_s29 }
  0x26   :  { %v66_v14 = vmul.f32 %v65_v11, %v39_v0  ;;  %v69_v17 = vmul.f32 %v103_v1, %v68_v15  ;;  %v72_v19 = vstv %s110_s30 }
  0x27   :  { %v59_v16 = vadd.f32 %v58_v10, %v55_v9  ;;  %v51_v18 = vadd.f32 %v50_v8, %v48_v12 }
  0x28   :  { %v70_v21 = vadd.f32 %v69_v17, %v66_v14 }
  0x29   :  { %v62_v20 = vadd.f32 %v61_v13, %v59_v16  ;;  %v52_v22 = vmax.f32 %v51_v18, 0.0 }
  0x2a   :  { %v73_v24 = vadd.f32 %v72_v19, %v70_v21 }
  0x2b   :  { %v63_v23 = vmax.f32 %v62_v20, 0.0 }
  0x2c   :  { %v74_v25 = vmax.f32 %v73_v24, 0.0 }
  0x2d   :  { %v75_v26 = vmax.f32 %v52_v22, %v63_v23 }
  0x2f   :  { %v76_v27 = vmax.f32 %v75_v26, %v74_v25 }
  0x31   :  { %v77_v28 = vsub.f32 %v52_v22, %v76_v27  ;;  %v80_v29 = vsub.f32 %v63_v23, %v76_v27  ;;  %v83_v30 = vsub.f32 %v74_v25, %v76_v27 }
  0x33   :  { %v78_v31 = vmul.f32 1.442695, %v77_v28  ;;  %v81_v32 = vmul.f32 1.442695, %v80_v29  ;;  %v84_v33 = vmul.f32 1.442695, %v83_v30 }
  0x35   :  { %115 = vpow2.f32 %v78_v31 }
  0x36   :  { %117 = vpow2.f32 %v81_v32 }
  0x37   :  { %119 = vpow2.f32 %v84_v33 }
  0x3f   :  { %v116_v34 = vpop.eup %115 }
  0x40   :  { %v118_v35 = vpop.eup %117 }
  0x41   :  { %v120_v36 = vpop.eup %119  ;;  %v86_v37 = vadd.f32 %v118_v35, %v116_v34 }
  0x43   :  { %v87_v38 = vadd.f32 %v120_v36, %v86_v37 }
  0x45   :  { %121 = vrcp.f32 %v87_v38 }
  0x4f   :  { %v122_v39 = vpop.eup %121 }
  0x50   :  { %v89_v40 = vmul.f32 %v122_v39, %v116_v34  ;;  %v91_v41 = vmul.f32 %v122_v39, %v118_v35  ;;  %v94_v42 = vmul.f32 %v122_v39, %v120_v36 }
  0x52   :  { %90 = vst [vmem:[%s197_s3] sm:$0x1] %v89_v40  ;;  %111 = vst [vmem:[%s197_s3 + $0x1] sm:$0x1] %v91_v41 }
  0x53   :  { %112 = vst [vmem:[%s197_s3 + $0x2] sm:$0x1] %v94_v42 }
  0x54   :  { %101 = vsyncpa [#allocation3], 1 }
  0x55   :  { %102 = vsyncpa [#allocation5], 1 }

</bundles_post_ra>
